<compile_context>
chip_gen: v7x
topology: tpu7x:2x2x1
jax: 0.10.0
libtpu: 0.0.40
codegen_flags: <defaults>
</compile_context>

<pallas_src>
import jax
import jax.numpy as jnp
from jax.experimental import pallas as pl
from jax.experimental.pallas import tpu as pltpu

EPS = 1e-5
_TINY_K_UNROLL = 8  # below/at this input width, skip the MXU and unroll on the VPU


def each_memory_layer_kernel(x_ref, w_ref, gb_ref, o_ref):
    x = x_ref[...]          # (N, K)
    w = w_ref[...]          # (K, H)
    n, k = x.shape

    # ---- Linear (bias omitted: cancelled exactly by BN mean subtraction) ----
    if k <= _TINY_K_UNROLL:
        # Tiny contraction dim: K broadcast multiply-adds on the VPU.
        h = x[:, 0:1] * w[0:1, :]
        for j in range(1, k):
            h = h + x[:, j:j + 1] * w[j:j + 1, :]
    else:
        h = jnp.dot(x, w, preferred_element_type=jnp.float32)

    # ---- Training-mode BatchNorm1d, single reduction pass ----
    inv_n = 1.0 / n
    s1 = jnp.sum(h, axis=0, keepdims=True)           # (1, H)
    s2 = jnp.sum(h * h, axis=0, keepdims=True)       # (1, H)
    mean = s1 * inv_n
    var = jnp.maximum(s2 * inv_n - mean * mean, 0.0)  # clamp E[x^2]-E[x]^2 cancellation

    gamma = gb_ref[0:1, :]                            # (1, H)
    beta = gb_ref[1:2, :]                             # (1, H)
    scale = gamma * jax.lax.rsqrt(var + EPS)          # rsqrt -> EUP (free slot)
    shift = beta - mean * scale

    # ---- fused scale/shift + ReLU, one pass over the big tensor ----
    o_ref[...] = jnp.maximum(h * scale + shift, 0.0).astype(o_ref.dtype)


def each_memory_layer(x, w, gamma, beta):
    """x: (N, in_features) f32; w: (in_features, hidden) f32; gamma/beta: (hidden,) f32."""
    n, _ = x.shape
    hidden = w.shape[1]
    # Pack the two per-feature vectors into one (2, hidden) slab -> one DMA.
    gb = jnp.concatenate(
        [gamma.reshape(1, hidden), beta.reshape(1, hidden)], axis=0
    )
    vmem = pl.BlockSpec(memory_space=pltpu.MemorySpace.VMEM)
    return pl.pallas_call(
        each_memory_layer_kernel,
        out_shape=jax.ShapeDtypeStruct((n, hidden), jnp.float32),
        in_specs=[vmem, vmem, vmem],
        out_specs=vmem,
    )(x, w, gb)


def init_params(key, input_size, hidden):
    """Deterministic synthetic parameters. Linear weight stored as (in, out)."""
    kw, kb, kg = jax.random.split(key, 3)
    bound = 1.0 / jnp.sqrt(input_size)  # mimic PyTorch default Linear init
    w = jax.random.uniform(kw, (input_size, hidden), jnp.float32, -bound, bound)
    b = jax.random.uniform(kb, (hidden,), jnp.float32, -bound, bound)
    gamma = 1.0 + 0.1 * jax.random.normal(kg, (hidden,), jnp.float32)
    beta = jnp.zeros((hidden,), jnp.float32)
    return dict(w=w, b=b, gamma=gamma, beta=beta)


def _reference(x, p):
    # Faithful PyTorch forward: Linear WITH bias -> train-mode BN -> ReLU.
    h = x @ p["w"] + p["b"][None, :]
    m = jnp.mean(h, axis=0, keepdims=True)
    v = jnp.mean((h - m) ** 2, axis=0, keepdims=True)  # biased variance
    h = (h - m) / jnp.sqrt(v + EPS) * p["gamma"][None, :] + p["beta"][None, :]
    return jnp.maximum(h, 0.0)


if __name__ == "__main__":
    key = jax.random.PRNGKey(0)
    k_x, k_p = jax.random.split(key)

    batch, input_size, hidden = 16, 4, 128  # hidden=128 -> lane-dense output store
    x = jax.random.normal(k_x, (batch, input_size), jnp.float32)
    params = init_params(k_p, input_size=input_size, hidden=hidden)

    out = each_memory_layer(x, params["w"], params["gamma"], params["beta"])
    out = jax.block_until_ready(out)

    ref = _reference(x, params)
    assert out.shape == (batch, hidden)
    assert jnp.allclose(out, ref, atol=1e-4, rtol=1e-4), "mismatch vs reference"

    print("KERNEL_OK")
</pallas_src>

<mosaic_0001>
module attributes {stable_mosaic.version = 11 : i64} {
  func.func @each_memory_layer_kernel(%arg0: memref<16x4xf32, #tpu.memory_space<vmem>>, %arg1: memref<4x128xf32, #tpu.memory_space<vmem>>, %arg2: memref<2x128xf32, #tpu.memory_space<vmem>>, %arg3: memref<16x128xf32, #tpu.memory_space<vmem>>) attributes {dimension_semantics = [], scalar_prefetch = 0 : i64, scratch_operands = 0 : i64, tpu.core_type = #tpu.core_type<tc>} {
    %c0 = arith.constant 0 : index
    %c0_0 = arith.constant 0 : index
    %0 = vector.load %arg0[%c0, %c0_0] : memref<16x4xf32, #tpu.memory_space<vmem>>, vector<16x4xf32>
    %c0_1 = arith.constant 0 : index
    %c0_2 = arith.constant 0 : index
    %1 = vector.load %arg1[%c0_1, %c0_2] : memref<4x128xf32, #tpu.memory_space<vmem>>, vector<4x128xf32>
    %2 = vector.extract_strided_slice %0 {offsets = [0, 0], sizes = [16, 1], strides = [1, 1]} : vector<16x4xf32> to vector<16x1xf32>
    %3 = vector.extract_strided_slice %1 {offsets = [0, 0], sizes = [1, 128], strides = [1, 1]} : vector<4x128xf32> to vector<1x128xf32>
    %4 = vector.broadcast %2 : vector<16x1xf32> to vector<16x128xf32>
    %5 = vector.broadcast %3 : vector<1x128xf32> to vector<16x128xf32>
    %6 = arith.mulf %4, %5 : vector<16x128xf32>
    %7 = vector.extract_strided_slice %0 {offsets = [0, 1], sizes = [16, 1], strides = [1, 1]} : vector<16x4xf32> to vector<16x1xf32>
    %8 = vector.extract_strided_slice %1 {offsets = [1, 0], sizes = [1, 128], strides = [1, 1]} : vector<4x128xf32> to vector<1x128xf32>
    %9 = vector.broadcast %7 : vector<16x1xf32> to vector<16x128xf32>
    %10 = vector.broadcast %8 : vector<1x128xf32> to vector<16x128xf32>
    %11 = arith.mulf %9, %10 : vector<16x128xf32>
    %12 = arith.addf %6, %11 : vector<16x128xf32>
    %13 = vector.extract_strided_slice %0 {offsets = [0, 2], sizes = [16, 1], strides = [1, 1]} : vector<16x4xf32> to vector<16x1xf32>
    %14 = vector.extract_strided_slice %1 {offsets = [2, 0], sizes = [1, 128], strides = [1, 1]} : vector<4x128xf32> to vector<1x128xf32>
    %15 = vector.broadcast %13 : vector<16x1xf32> to vector<16x128xf32>
    %16 = vector.broadcast %14 : vector<1x128xf32> to vector<16x128xf32>
    %17 = arith.mulf %15, %16 : vector<16x128xf32>
    %18 = arith.addf %12, %17 : vector<16x128xf32>
    %19 = vector.extract_strided_slice %0 {offsets = [0, 3], sizes = [16, 1], strides = [1, 1]} : vector<16x4xf32> to vector<16x1xf32>
    %20 = vector.extract_strided_slice %1 {offsets = [3, 0], sizes = [1, 128], strides = [1, 1]} : vector<4x128xf32> to vector<1x128xf32>
    %21 = vector.broadcast %19 : vector<16x1xf32> to vector<16x128xf32>
    %22 = vector.broadcast %20 : vector<1x128xf32> to vector<16x128xf32>
    %23 = arith.mulf %21, %22 : vector<16x128xf32>
    %24 = arith.addf %18, %23 : vector<16x128xf32>
    %cst = arith.constant dense<0.000000e+00> : vector<128xf32>
    %25 = vector.multi_reduction <add>, %24, %cst [0] : vector<16x128xf32> to vector<128xf32>
    %26 = vector.shape_cast %25 : vector<128xf32> to vector<1x128xf32>
    %27 = arith.mulf %24, %24 : vector<16x128xf32>
    %cst_3 = arith.constant dense<0.000000e+00> : vector<128xf32>
    %28 = vector.multi_reduction <add>, %27, %cst_3 [0] : vector<16x128xf32> to vector<128xf32>
    %29 = vector.shape_cast %28 : vector<128xf32> to vector<1x128xf32>
    %cst_4 = arith.constant 6.250000e-02 : f32
    %30 = vector.broadcast %cst_4 : f32 to vector<1x128xf32>
    %31 = arith.mulf %26, %30 : vector<1x128xf32>
    %cst_5 = arith.constant 6.250000e-02 : f32
    %32 = vector.broadcast %cst_5 : f32 to vector<1x128xf32>
    %33 = arith.mulf %29, %32 : vector<1x128xf32>
    %34 = arith.mulf %31, %31 : vector<1x128xf32>
    %35 = arith.subf %33, %34 : vector<1x128xf32>
    %cst_6 = arith.constant 0.000000e+00 : f32
    %36 = vector.broadcast %cst_6 : f32 to vector<1x128xf32>
    %37 = arith.maximumf %35, %36 : vector<1x128xf32>
    %c0_7 = arith.constant 0 : index
    %c0_8 = arith.constant 0 : index
    %38 = vector.load %arg2[%c0_7, %c0_8] : memref<2x128xf32, #tpu.memory_space<vmem>>, vector<1x128xf32>
    %c1 = arith.constant 1 : index
    %c0_9 = arith.constant 0 : index
    %39 = vector.load %arg2[%c1, %c0_9] : memref<2x128xf32, #tpu.memory_space<vmem>>, vector<1x128xf32>
    %cst_10 = arith.constant 9.99999974E-6 : f32
    %40 = vector.broadcast %cst_10 : f32 to vector<1x128xf32>
    %41 = arith.addf %37, %40 : vector<1x128xf32>
    %42 = math.rsqrt %41 : vector<1x128xf32>
    %43 = arith.mulf %38, %42 : vector<1x128xf32>
    %44 = arith.mulf %31, %43 : vector<1x128xf32>
    %45 = arith.subf %39, %44 : vector<1x128xf32>
    %46 = vector.broadcast %43 : vector<1x128xf32> to vector<16x128xf32>
    %47 = arith.mulf %24, %46 : vector<16x128xf32>
    %48 = vector.broadcast %45 : vector<1x128xf32> to vector<16x128xf32>
    %49 = arith.addf %47, %48 : vector<16x128xf32>
    %cst_11 = arith.constant 0.000000e+00 : f32
    %50 = vector.broadcast %cst_11 : f32 to vector<16x128xf32>
    %51 = arith.maximumf %49, %50 : vector<16x128xf32>
    %c0_12 = arith.constant 0 : index
    %c0_13 = arith.constant 0 : index
    %52 = vector.load %arg3[%c0_12, %c0_13] : memref<16x128xf32, #tpu.memory_space<vmem>>, vector<16x128xf32>
    tpu.vector_store %arg3[%c0_12, %c0_13], %51 {strides = array<i32>} : memref<16x128xf32, #tpu.memory_space<vmem>>, vector<16x128xf32>,
    return
  }
}

</mosaic_0001>

<bundles_post_ra>
// kernel: tpu_custom_call.1
= control target key start
LH: loop header
LB: loop body
LE: loop exit
PB: predicated region body
PF: predicated region fallthrough
CT: control target
= control target key end

     0   :  { %v181_v1 = vmov 1   ;;  %v182_v2 = vmov 0   ;;  %s235_s0 = inlined_call_operand.vmem [shape: f32[16,4], index: 0, kind: input, shape index: {}]   ;;  %s236_s1 = inlined_call_operand.vmem [shape: f32[4,128], index: 1, kind: input, shape index: {}]   ;;  %s237_s2 = inlined_call_operand.vmem [shape: f32[2,128], index: 2, kind: input, shape index: {}]   ;;  %s238_s3 = inlined_call_operand.hbm [shape: f32[16,128], index: 3, kind: output, shape index: {}]  }
   0x1   :  { %v15_v0 = vld [vmem:[%s235_s0] sm:$0xff]  ;;  %150 = vset.pattern.permute.xlu1 %v181_v1  ;;  %149 = vset.pattern.permute.xlu0 %v182_v2 }
   0x2   :  { %8 = vsyncpa [#allocation3], 0  ;;  %35 = vperm.xlu1 %150, %v15_v0   ;;  %20 = vperm.xlu0 %149, %v15_v0   ;;  %v16_v3 = vld [vmem:[%s235_s0 + $0x8] sm:$0xff]  ;;  %v183_v4 = vmov 2   ;;  %v184_v5 = vmov 3   ;;  %v28_v6 = vlaneseq  ;;  %s185_s20 = smov [#allocation2]  }
   0x3   :  { %v17_v12 = vld [vmem:[%s236_s1] sm:$0xf]  ;;  %s131_s21 = sshll.u32 %s185_s20, 4  ;;  %s132_s21 = int_to_ptr.vmem [resolvable:$true] %s131_s21 }
   0x4   :  { %v29_v7 = vshrl.u32 %v28_v6, 7  ;;  %v103_v61 = vld [vmem:[%s237_s2] sm:$0x1]  ;;  %s157_s22 = scalar_lea.vmem %s132_s21, 256  ;;  %p162_p1 = scmp.lt.s32.totalorder %s132_s21, %s132_s21 }
   0x5   :  { %p158_p0 = scmp.ne.s32.totalorder %s132_s21, %s157_s22  ;;  %p163_p2 = scmp.lt.s32.totalorder %s157_s22, %s157_s22 }
   0x6   :  { %39 = vperm.xlu1 %150, %v16_v3   ;;  %25 = vperm.xlu0 %149, %v16_v3   ;;  %v44_v10 = vsub.s32 1, %v29_v7  ;;  %v30_v11 = vsub.s32 0, %v29_v7  ;;  %v60_v13 = vsub.s32 2, %v29_v7  ;;  %v76_v19 = vsub.s32 3, %v29_v7 }
   0x7   :  { %p164_p3 = por %p163_p2, %p162_p1 }
   0x8   :  { %v45_v16 = vrot.slane %v17_v12, %v44_v10  ;;  %v31_v17 = vrot.slane %v17_v12, %v30_v11  ;;  %v61_v18 = vrot.slane %v17_v12, %v60_v13  ;;  %v77_v28 = vrot.slane %v17_v12, %v76_v19 }
   0x9   :  { %p165_p4 = pnand %p164_p3, %p158_p0 }
   0xa   :  { %152 = vset.pattern.permute.xlu1 %v183_v4  ;;  %151 = vset.pattern.permute.xlu0 %v183_v4 }
   0xb   :  { %55 = vperm.xlu1 %152, %v16_v3   ;;  %51 = vperm.xlu0 %151, %v15_v0  }
   0xf   :  { %153 = vset.pattern.permute.xlu1 %v184_v5  ;;  %154 = vset.pattern.permute.xlu0 %v184_v5 }
  0x10   :  { %67 = vperm.xlu1 %153, %v15_v0   ;;  %71 = vperm.xlu0 %154, %v16_v3   ;;  %v104_v0 = vld [vmem:[%s237_s2 + $0x1] sm:$0x1] }
  0x81   :  { %v36_v8 = vpop.permute.xlu1 %35  ;;  %v21_v9 = vpop.permute.xlu0 %20 }
  0x82   :  { %v46_v20 = vmul.f32 %v45_v16, %v36_v8  ;;  %v32_v21 = vmul.f32 %v31_v17, %v21_v9 }
  0x84   :  { %v48_v29 = vadd.f32 %v46_v20, %v32_v21 }
  0x85   :  { %v40_v14 = vpop.permute.xlu1 %39  ;;  %v26_v15 = vpop.permute.xlu0 %25 }
  0x86   :  { %v47_v22 = vmul.f32 %v45_v16, %v40_v14  ;;  %v33_v23 = vmul.f32 %v31_v17, %v26_v15 }
  0x88   :  { %v49_v30 = vadd.f32 %v47_v22, %v33_v23 }
  0x8a   :  { %v56_v24 = vpop.permute.xlu1 %55  ;;  %v52_v25 = vpop.permute.xlu0 %51 }
  0x8b   :  { %v63_v26 = vmul.f32 %v61_v18, %v56_v24  ;;  %v62_v27 = vmul.f32 %v61_v18, %v52_v25 }
  0x8d   :  { %v65_v33 = vadd.f32 %v63_v26, %v49_v30  ;;  %v64_v34 = vadd.f32 %v62_v27, %v48_v29 }
  0x8f   :  { %v68_v31 = vpop.permute.xlu1 %67  ;;  %v72_v32 = vpop.permute.xlu0 %71 }
  0x90   :  { %v78_v35 = vmul.f32 %v77_v28, %v68_v31  ;;  %v79_v36 = vmul.f32 %v77_v28, %v72_v32 }
  0x92   :  { %v80_v37 = vadd.f32 %v78_v35, %v64_v34  ;;  %v81_v38 = vadd.f32 %v79_v36, %v65_v33 }
  0x94   :  { %v89_v39 = vmul.f32 %v80_v37, %v80_v37  ;;  %v82_v40 = vadd.f32 %v81_v38, %v80_v37  ;;  %v90_v41 = vmul.f32 %v81_v38, %v81_v38 }
  0x96   :  { %v83_v42 = vrot.slane %v82_v40, 4  ;;  %v91_v43 = vadd.f32 %v90_v41, %v89_v39 }
  0x98   :  { %v84_v44 = vadd.f32 %v83_v42, %v82_v40  ;;  %v92_v45 = vrot.slane %v91_v43, 4 }
  0x9a   :  { %v85_v46 = vrot.slane %v84_v44, 2  ;;  %v93_v47 = vadd.f32 %v92_v45, %v91_v43 }
  0x9c   :  { %v86_v48 = vadd.f32 %v85_v46, %v84_v44  ;;  %v94_v49 = vrot.slane %v93_v47, 2 }
  0x9e   :  { %v87_v50 = vrot.slane %v86_v48, 1  ;;  %v95_v51 = vadd.f32 %v94_v49, %v93_v47 }
  0xa0   :  { %v88_v52 = vadd.f32 %v87_v50, %v86_v48  ;;  %v96_v53 = vrot.slane %v95_v51, 1 }
  0xa2   :  { %v97_v54 = vadd.f32 %v96_v53, %v95_v51  ;;  %v98_v55 = vmul.f32 0.0625, %v88_v52 }
  0xa4   :  { %v99_v56 = vmul.f32 0.0625, %v97_v54  ;;  %v100_v57 = vmul.f32 %v98_v55, %v98_v55 }
  0xa6   :  { %v101_v58 = vsub.f32 %v99_v56, %v100_v57 }
  0xa8   :  { %v102_v59 = vmax.f32 %v101_v58, 0.0 }
  0xaa   :  { %v105_v60 = vadd.f32 1e-05, %v102_v59 }
  0xac   :  { %155 = vrsqrt.f32 %v105_v60 }
  0xb6   :  { %v156_v62 = vpop.eup %155 }
  0xb7   :  { %v107_v63 = vmul.f32 %v156_v62, %v103_v61 }
  0xb9   :  { %v108_v1 = vmul.f32 %v107_v63, %v98_v55  ;;  %v113_v2 = vrot.slane %v107_v63, %v30_v11 }
  0xbb   :  { %v109_v3 = vsub.f32 %v104_v0, %v108_v1  ;;  %v114_v4 = vmul.f32 %v113_v2, %v80_v37  ;;  %v115_v5 = vmul.f32 %v113_v2, %v81_v38 }
  0xbd   :  { %v119_v6 = vrot.slane %v109_v3, %v30_v11 }
  0xbf   :  { %v121_v7 = vadd.f32 %v119_v6, %v115_v5  ;;  %v120_v8 = vadd.f32 %v119_v6, %v114_v4 }
  0xc1   :  { %v122_v9 = vmax.f32 %v120_v8, 0.0  ;;  %v123_v10 = vmax.f32 %v121_v7, 0.0 }
  0xc3   :  { %124 = vst [vmem:[#allocation2] sm:$0xff] %v122_v9  ;;  %125 = vst [vmem:[#allocation2 + $0x8] sm:$0xff] %v123_v10 }
  0xc4   :  { %168 = shalt.err (!%p165_p4)
}
  0xc5   :  { %s169_s24 = scalar_lea.hbm %s238_s3, 256 }
  0xc6   :  { %p170_p5 = scmp.ne.s32.totalorder %s238_s3, %s169_s24  ;;  %p173_p6 = scmp.lt.u32.totalorder %s169_s24, %s238_s3 }
  0xc8   :  { %p175_p7 = pnand %p173_p6, %p170_p5 }
  0xca   :  { %178 = shalt.err (!%p175_p7)
}
  0xcb   :  { %s186_s29 = smov 128   ;;  %s187_s30 = smov 8  }
  0xcc   :  { %137 = dma.vmem_to_hbm [thread:$0]  %s132_s21, 256, %s238_s3, [#allocation3], %s186_s29, %s186_s29, %s187_s30  }
  0xcd   :  { %179 = dma.done.wait [#allocation3], 256  }
  0xce   :  { %180 = vsyncadd [#allocation3], 4294967040 }
  0xcf   :  { %141 = vsyncpa [#allocation3], 1 }

</bundles_post_ra>
